<compile_context>
chip_gen: v7x
topology: tpu7x:2x2x1
jax: 0.10.0
libtpu: 0.0.40
codegen_flags: <defaults>
</compile_context>

<pallas_src>
import math

import jax
import jax.numpy as jnp
import numpy as np
from jax.experimental import pallas as pl
from jax.experimental.pallas import tpu as pltpu


def _round_up(x, m):
    return ((x + m - 1) // m) * m


def _linear_kernel(x_ref, w_ref, b_ref, o_ref):
    # x_ref: (tm, K), w_ref: (K, tn), b_ref: (1, tn), o_ref: (tm, tn)
    acc = jnp.dot(x_ref[...], w_ref[...], preferred_element_type=jnp.float32)
    o_ref[...] = (acc + b_ref[...]).astype(o_ref.dtype)


def _pick_tm(M, K, tn, dtype_bytes, budget_bytes):
    """Largest 8-aligned M tile (<= 512) whose double-buffered working set fits VMEM."""
    tm = min(512, _round_up(max(M, 1), 8))
    while tm > 8:
        # double-buffered activation + weight + output tiles
        need = 2 * dtype_bytes * (tm * K + K * tn + tm * tn)
        if need <= budget_bytes:
            break
        tm = _round_up(tm // 2, 8)
    return max(tm, 8)


def _tiled_linear(x2d, weight, bias, *, tn=512, vmem_limit_bytes=64 << 20):
    """y = x2d @ weight.T + bias as a tiled Pallas GEMM.

    x2d:    [M, K]        (K == c_in of the Linear)
    weight: [d_model, K]  (PyTorch nn.Linear layout)
    bias:   [d_model]
    returns [M, d_model]
    """
    M, K = x2d.shape
    d_model = weight.shape[0]
    dtype_bytes = jnp.dtype(x2d.dtype).itemsize

    # Lane-dense N tiles (multiple of 128) so stores are full, unmasked vst.
    tn_eff = min(tn, _round_up(d_model, 128))
    n_pad = _round_up(d_model, tn_eff)
    # Large, 8-aligned M tiles, shrunk if K is big enough to threaten VMEM.
    tm_eff = _pick_tm(M, K, tn_eff, dtype_bytes, vmem_limit_bytes // 2)
    m_pad = _round_up(M, tm_eff)

    x_p = x2d if m_pad == M else jnp.pad(x2d, ((0, m_pad - M), (0, 0)))
    w_t = weight.T                       # [K, d_model]
    b_row = bias[None, :]                # [1, d_model]
    if n_pad != d_model:
        w_t = jnp.pad(w_t, ((0, 0), (0, n_pad - d_model)))
        b_row = jnp.pad(b_row, ((0, 0), (0, n_pad - d_model)))

    # N outermost / M innermost: weight+bias block index only depends on j, so the
    # resident weight tile is not re-DMA'd across consecutive M steps.
    grid = (n_pad // tn_eff, m_pad // tm_eff)

    out = pl.pallas_call(
        _linear_kernel,
        out_shape=jax.ShapeDtypeStruct((m_pad, n_pad), x2d.dtype),
        grid_spec=pltpu.PrefetchScalarGridSpec(
            num_scalar_prefetch=0,
            grid=grid,
            in_specs=[
                pl.BlockSpec((tm_eff, K), lambda j, i: (i, 0)),   # activations
                pl.BlockSpec((K, tn_eff), lambda j, i: (0, j)),   # weight (invariant in i)
                pl.BlockSpec((1, tn_eff), lambda j, i: (0, j)),   # bias
            ],
            out_specs=pl.BlockSpec((tm_eff, tn_eff), lambda j, i: (i, j)),
        ),
        compiler_params=pltpu.CompilerParams(
            dimension_semantics=("parallel", "parallel"),
            vmem_limit_bytes=vmem_limit_bytes,
        ),
    )(x_p, w_t, b_row)

    if m_pad == M and n_pad == d_model:
        return out
    return out[:M, :d_model]


def data_embedding_inverted(x, x_mark, weight, bias):
    """Forward pass of DataEmbedding_inverted.

    weight: [d_model, c_in], bias: [d_model].
    x_mark is None  -> Linear(x)                                 (x: [..., c_in])
    x_mark not None -> Linear(cat([x^T, x_mark^T], dim=1))       (x: [B, L, N], x_mark: [B, L, Nm], L == c_in)
    Dropout(p=0.1) is the identity at inference time and is therefore omitted.
    """
    if x_mark is None:
        inp = x
    else:
        inp = jnp.concatenate(
            [jnp.swapaxes(x, 1, 2), jnp.swapaxes(x_mark, 1, 2)], axis=1
        )  # [B, N + Nm, c_in]
    lead = inp.shape[:-1]
    k = inp.shape[-1]
    y2d = _tiled_linear(inp.reshape(-1, k), weight, bias)
    return y2d.reshape(*lead, weight.shape[0])


if __name__ == "__main__":
    key = jax.random.PRNGKey(0)
    k_w, k_b, k_x, k_m = jax.random.split(key, 4)

    # Small shapes: batch=2, seq_len (== c_in of the Linear) = 8, 4 variates,
    # 3 time-mark features, hidden d_model = 32.
    B, L, N_var, N_mark, d_model = 2, 8, 4, 3, 32
    c_in = L

    # nn.Linear-like init scale (exact distribution irrelevant for the kernel check).
    scale = 1.0 / math.sqrt(c_in)
    weight = scale * jax.random.normal(k_w, (d_model, c_in), dtype=jnp.float32)
    bias = scale * jax.random.normal(k_b, (d_model,), dtype=jnp.float32)

    x = jax.random.normal(k_x, (B, L, N_var), dtype=jnp.float32)
    x_mark = jax.random.normal(k_m, (B, L, N_mark), dtype=jnp.float32)

    # Branch with time-feature marks (x permuted + concatenated with x_mark^T).
    out = jax.block_until_ready(data_embedding_inverted(x, x_mark, weight, bias))
    ref = (
        jnp.concatenate([jnp.swapaxes(x, 1, 2), jnp.swapaxes(x_mark, 1, 2)], axis=1)
        @ weight.T
        + bias
    )
    assert out.shape == (B, N_var + N_mark, d_model)
    assert np.allclose(np.asarray(out), np.asarray(ref), rtol=1e-5, atol=1e-5)

    # Branch without marks: Linear applied directly to the last dim of x.
    x_nomark = jax.random.normal(k_x, (B, N_var, c_in), dtype=jnp.float32)
    out2 = jax.block_until_ready(data_embedding_inverted(x_nomark, None, weight, bias))
    ref2 = x_nomark @ weight.T + bias
    assert out2.shape == (B, N_var, d_model)
    assert np.allclose(np.asarray(out2), np.asarray(ref2), rtol=1e-5, atol=1e-5)

    print("KERNEL_OK")
</pallas_src>

<mosaic_0001>
module attributes {stable_mosaic.version = 11 : i64} {
  func.func @_linear_kernel(%arg0: i32, %arg1: i32, %arg2: memref<16x8xf32, #tpu.memory_space<vmem>>, %arg3: memref<8x128xf32, #tpu.memory_space<vmem>>, %arg4: memref<1x128xf32, #tpu.memory_space<vmem>>, %arg5: memref<16x128xf32, #tpu.memory_space<vmem>>) attributes {dimension_semantics = [#tpu.dimension_semantics<parallel>, #tpu.dimension_semantics<parallel>], iteration_bounds = array<i64: 1, 1>, scalar_prefetch = 0 : i64, scratch_operands = 0 : i64, tpu.core_type = #tpu.core_type<tc>, window_params = [{transform_indices = @transform_0, window_bounds = array<i64: 16, 8>}, {transform_indices = @transform_1, window_bounds = array<i64: 8, 128>}, {transform_indices = @transform_2, window_bounds = array<i64: 1, 128>}, {transform_indices = @transform_3, window_bounds = array<i64: 16, 128>}]} {
    %c0 = arith.constant 0 : index
    %c0_0 = arith.constant 0 : index
    %0 = vector.load %arg2[%c0, %c0_0] : memref<16x8xf32, #tpu.memory_space<vmem>>, vector<16x8xf32>
    %c0_1 = arith.constant 0 : index
    %c0_2 = arith.constant 0 : index
    %1 = vector.load %arg3[%c0_1, %c0_2] : memref<8x128xf32, #tpu.memory_space<vmem>>, vector<8x128xf32>
    %cst = arith.constant dense<0.000000e+00> : vector<16x128xf32>
    %2 = tpu.matmul %0, %1, %cst {dimension_numbers = #tpu.dot_dimension_numbers<[1], [0], [0], [1], [0, 0, 1, 1], [], []>} : vector<16x8xf32>, vector<8x128xf32>, vector<16x128xf32> -> vector<16x128xf32>
    %c0_3 = arith.constant 0 : index
    %c0_4 = arith.constant 0 : index
    %3 = vector.load %arg4[%c0_3, %c0_4] : memref<1x128xf32, #tpu.memory_space<vmem>>, vector<1x128xf32>
    %4 = vector.broadcast %3 : vector<1x128xf32> to vector<16x128xf32>
    %5 = arith.addf %2, %4 : vector<16x128xf32>
    %c0_5 = arith.constant 0 : index
    %c0_6 = arith.constant 0 : index
    %6 = vector.load %arg5[%c0_5, %c0_6] : memref<16x128xf32, #tpu.memory_space<vmem>>, vector<16x128xf32>
    tpu.vector_store %arg5[%c0_5, %c0_6], %5 {strides = array<i32>} : memref<16x128xf32, #tpu.memory_space<vmem>>, vector<16x128xf32>,
    return
  }
  func.func @transform_0(%arg0: i32, %arg1: i32) -> (i32, i32) {
    %c0_i32 = arith.constant 0 : i32
    %c0_i32_0 = arith.constant 0 : i32
    return %arg1, %c0_i32 : i32, i32
  }
  func.func @transform_1(%arg0: i32, %arg1: i32) -> (i32, i32) {
    %c0_i32 = arith.constant 0 : i32
    %c0_i32_0 = arith.constant 0 : i32
    return %c0_i32, %arg0 : i32, i32
  }
  func.func @transform_2(%arg0: i32, %arg1: i32) -> (i32, i32) {
    %c0_i32 = arith.constant 0 : i32
    %c0_i32_0 = arith.constant 0 : i32
    return %c0_i32, %arg0 : i32, i32
  }
  func.func @transform_3(%arg0: i32, %arg1: i32) -> (i32, i32) {
    %c0_i32 = arith.constant 0 : i32
    return %arg1, %arg0 : i32, i32
  }
}

</mosaic_0001>

<bundles_post_ra>
// kernel: tpu_custom_call.1
= control target key start
LH: loop header
LB: loop body
LE: loop exit
PB: predicated region body
PF: predicated region fallthrough
CT: control target
= control target key end

     0   :  { %8 = vsyncpa [#allocation3], 0  ;;  %s362_s0 = inlined_call_operand.hbm [shape: f32[16,8], index: 0, kind: input, shape index: {}]   ;;  %s363_s1 = inlined_call_operand.hbm [shape: f32[8,128], index: 1, kind: input, shape index: {}]   ;;  %s364_s2 = inlined_call_operand.hbm [shape: f32[1,128], index: 2, kind: input, shape index: {}]   ;;  %s365_s3 = inlined_call_operand.hbm [shape: f32[16,128], index: 3, kind: output, shape index: {}]  }
   0x1   :  { %9 = vsyncpa [#allocation6], 0 }
   0x2   :  { %10 = vsyncpa [#allocation4], 0  ;;  %s275_s12 = smov [#allocation5]   ;;  %s276_s14 = smov [#allocation2]  }
   0x3   :  { %s29_s13 = sshll.u32 %s275_s12, 4  ;;  %s16_s15 = sshll.u32 %s276_s14, 4  ;;  %s30_s13 = int_to_ptr.vmem [resolvable:$true] %s29_s13  ;;  %s301_s15 = int_to_ptr.vmem [resolvable:$true] %s16_s15 }
   0x4   :  { %s181_s18 = scalar_lea.hbm %s363_s1, 128 }
   0x5   :  { %p182_p0 = scmp.ne.s32.totalorder %s363_s1, %s181_s18  ;;  %p185_p1 = scmp.lt.u32.totalorder %s181_s18, %s363_s1 }
   0x7   :  { %p187_p2 = pnand %p185_p1, %p182_p0 }
   0x9   :  { %190 = shalt.err (!%p187_p2)
}
   0xa   :  { %s191_s23 = scalar_lea.vmem %s30_s13, 128  ;;  %p196_p4 = scmp.lt.s32.totalorder %s30_s13, %s30_s13 }
   0xb   :  { %p192_p3 = scmp.ne.s32.totalorder %s30_s13, %s191_s23  ;;  %p197_p5 = scmp.lt.s32.totalorder %s191_s23, %s191_s23 }
   0xd   :  { %p198_p6 = por %p197_p5, %p196_p4 }
   0xf   :  { %p199_p7 = pnand %p198_p6, %p192_p3 }
  0x11   :  { %202 = shalt.err (!%p199_p7)
}
  0x12   :  { %32 = dma.hbm_to_vmem [thread:$0]  %s363_s1, 128, %s30_s13, [#allocation6]  }
  0x13   :  { %s203_s28 = scalar_lea.hbm %s362_s0, 256 }
  0x14   :  { %p204_p8 = scmp.ne.s32.totalorder %s362_s0, %s203_s28  ;;  %p207_p9 = scmp.lt.u32.totalorder %s203_s28, %s362_s0 }
  0x16   :  { %p209_p10 = pnand %p207_p9, %p204_p8 }
  0x18   :  { %212 = shalt.err (!%p209_p10)
}
  0x19   :  { %s213_s6 = scalar_lea.vmem %s301_s15, 256  ;;  %p218_p12 = scmp.lt.s32.totalorder %s301_s15, %s301_s15 }
  0x1a   :  { %p214_p11 = scmp.ne.s32.totalorder %s301_s15, %s213_s6  ;;  %p219_p13 = scmp.lt.s32.totalorder %s213_s6, %s213_s6 }
  0x1c   :  { %p220_p0 = por %p219_p13, %p218_p12 }
  0x1e   :  { %p221_p1 = pnand %p220_p0, %p214_p11 }
  0x20   :  { %224 = shalt.err (!%p221_p1)
}
  0x21   :  { %s277_s1 = smov 128   ;;  %s278_s7 = smov 8  }
  0x22   :  { %22 = dma.hbm_to_vmem [thread:$0]  %s362_s0, 256, %s301_s15, [#allocation3], %s277_s1, %s277_s1, %s278_s7  }
  0x23   :  { %s279_s10 = smov [#allocation7]   ;;  %s225_s14 = scalar_lea.hbm %s364_s2, 16 }
  0x24   :  { %s39_s11 = sshll.u32 %s279_s10, 4  ;;  %p226_p2 = scmp.ne.s32.totalorder %s364_s2, %s225_s14  ;;  %s40_s11 = int_to_ptr.vmem [resolvable:$true] %s39_s11 }
  0x25   :  { %p229_p3 = scmp.lt.u32.totalorder %s225_s14, %s364_s2 }
  0x27   :  { %p231_p4 = pnand %p229_p3, %p226_p2 }
  0x29   :  { %234 = shalt.err (!%p231_p4)
}
  0x2a   :  { %s235_s20 = scalar_lea.vmem %s40_s11, 16  ;;  %s239_s0 = scalar_lea.vmem %s40_s11, 32 }
  0x2b   :  { %p236_p5 = scmp.ne.s32.totalorder %s40_s11, %s235_s20  ;;  %p240_p6 = scmp.lt.s32.totalorder %s40_s11, %s40_s11 }
  0x2c   :  { %p241_p7 = scmp.lt.s32.totalorder %s239_s0, %s235_s20 }
  0x2e   :  { %p242_p8 = por %p241_p7, %p240_p6 }
  0x30   :  { %p243_p9 = pnand %p242_p8, %p236_p5 }
  0x32   :  { %246 = shalt.err (!%p243_p9)
}
  0x33   :  { %42 = dma.hbm_to_vmem [thread:$0]  %s364_s2, 16, %s40_s11, [#allocation6]  }
  0x34   :  { %269 = dma.done.wait [#allocation3], 256  }
  0x35   :  { %270 = vsyncadd [#allocation3], 4294967040 }
  0x36   :  { %271 = dma.done.wait [#allocation6], 144  }
  0x37   :  { %272 = vsyncadd [#allocation6], 4294967152  ;;  %vm62_vm0 = vcmask 64512   ;;  %v54_v0 = vld [vmem:[#allocation5] sm:$0xff]  ;;  %v52_v1 = vld [vmem:[#allocation2] sm:$0xff]  ;;  %s280_s22 = smov [#allocation8]  }
  0x38   :  { %v53_v2 = vld [vmem:[#allocation2 + $0x8] sm:$0xff]  ;;  %170 = vmatprep.subr.mxu0 %v54_v0  ;;  %172 = vmatprep.mubr.msk.f32.mxu0 %vm62_vm0, %v52_v1  ;;  %v164_v3 = vld [vmem:[#allocation7] ss:$0 sm:$0xff]  ;;  %s151_s23 = sshll.u32 %s280_s22, 4  ;;  %s152_s23 = int_to_ptr.vmem [resolvable:$true] %s151_s23 }
  0x39   :  { %171 = vmatpush3.msra.mxu0 %v54_v0  ;;  %s247_s2 = scalar_lea.vmem %s152_s23, 256  ;;  %p252_p11 = scmp.lt.s32.totalorder %s152_s23, %s152_s23 }
  0x3a   :  { %173 = vmatmul.mubr.msk.f32.vlgmr.msra.gmra.mrb[0].mxu0 %vm62_vm0, %v53_v2  ;;  %p248_p10 = scmp.ne.s32.totalorder %s152_s23, %s247_s2  ;;  %p253_p12 = scmp.lt.s32.totalorder %s247_s2, %s247_s2 }
  0x3c   :  { %p254_p13 = por %p253_p12, %p252_p11 }
  0x3e   :  { %p255_p0 = pnand %p254_p13, %p248_p10 }
 0x10d   :  { %v174_v4 = vpop.f32.mrb[0].mxu0 }
 0x10e   :  { %v141_v5 = vadd.f32 %v174_v4, %v164_v3  ;;  %v135_v6 = vpop.f32.mrb[1].mxu0 }
 0x10f   :  { %v136_v7 = vadd.f32 %v164_v3, %v135_v6 }
 0x110   :  { %145 = vst [vmem:[#allocation8 + $0x8] sm:$0xff] %v141_v5 }
 0x111   :  { %144 = vst [vmem:[#allocation8] sm:$0xff] %v136_v7 }
 0x112   :  { %258 = shalt.err (!%p255_p0)
}
 0x113   :  { %s259_s26 = scalar_lea.hbm %s365_s3, 256 }
 0x114   :  { %p260_p1 = scmp.ne.s32.totalorder %s365_s3, %s259_s26  ;;  %p263_p2 = scmp.lt.u32.totalorder %s259_s26, %s365_s3 }
 0x116   :  { %p265_p3 = pnand %p263_p2, %p260_p1 }
 0x118   :  { %268 = shalt.err (!%p265_p3)
}
 0x119   :  { %157 = dma.vmem_to_hbm [thread:$0]  %s152_s23, 256, %s365_s3, [#allocation4], %s277_s1, %s277_s1, %s278_s7  }
 0x11a   :  { %273 = dma.done.wait [#allocation4], 256  }
 0x11b   :  { %274 = vsyncadd [#allocation4], 4294967040 }
 0x11c   :  { %161 = vsyncpa [#allocation3], 1 }
 0x11d   :  { %162 = vsyncpa [#allocation6], 1 }
 0x11e   :  { %163 = vsyncpa [#allocation4], 1 }

</bundles_post_ra>
